<compile_context>
chip_gen: v7x
topology: tpu7x:2x2x1
jax: 0.10.0
libtpu: 0.0.40
codegen_flags: <defaults>
</compile_context>

<pallas_src>
import math

import jax
import jax.numpy as jnp
from jax.experimental import pallas as pl
from jax.experimental.pallas import tpu as pltpu

NEG_SLOPE = 0.01   # torch LeakyReLU default
LANES = 128        # lane-dense width of every layer output
VIS_IN = 121       # 11*11 flattened vision features
SM_IN = 8          # prev_scent(3) + curr_scent(3) + 10*prev_moved + 10*curr_moved


def _leaky(x):
    return jnp.where(x > 0, x, NEG_SLOPE * x)


# ---------------------------------------------------------------------------
# Kernel: one grid step processes `tm` (prev, curr) pairs.
#   pv_ref / cv_ref : (tm, 121) f32   raw flattened vision (bf16-cast in-kernel)
#   sm_ref          : (tm, 8)   f32   [prev_scent, curr_scent, 10*pm, 10*cm]
#   w1_ref          : (121, 128) bf16 vision Linear(121,50); cols 0:50 live
#   wsq_ref         : (4, 128, 128) bf16 [W2 | alpha*W3[0:10] | alpha*W3[10:20] | W4]
#   w3s_ref         : (8, 128)  bf16  [beta*W3[20:26] ; W3[26:28]]
#   bias_ref        : (4, 128)  f32   [b1; b2; b3; b4]  (broadcast VPU adds)
#   out_ref         : (tm, 128) f32   lane-dense; cols 0:10 are the real outputs
# ---------------------------------------------------------------------------
def icm_features_kernel(pv_ref, cv_ref, sm_ref, w1_ref, wsq_ref, w3s_ref,
                        bias_ref, out_ref):
    w1 = w1_ref[...]
    w2, w3a, w3b, w4 = wsq_ref[0], wsq_ref[1], wsq_ref[2], wsq_ref[3]
    b1 = bias_ref[0:1, :]
    b2 = bias_ref[1:2, :]
    b3 = bias_ref[2:3, :]
    b4 = bias_ref[3:4, :]

    def vision_mlp(x_ref):
        x = x_ref[...].astype(jnp.bfloat16)                       # (tm, 121)
        h = _leaky(jnp.dot(x, w1, preferred_element_type=jnp.float32) + b1)
        v = _leaky(jnp.dot(h.astype(jnp.bfloat16), w2,
                           preferred_element_type=jnp.float32) + b2)
        return v.astype(jnp.bfloat16)                              # (tm, 128)

    # TODO(synk): the prev/curr streams could share one (2*tm,128) matmul per
    # vision layer, but with activations streamed raw from HBM that needs an
    # in-kernel stacking copy that costs about what the saved weight pushes buy.
    vp = vision_mlp(pv_ref)
    vc = vision_mlp(cv_ref)
    sm = sm_ref[...].astype(jnp.bfloat16)                          # (tm, 8)

    # combined Linear(28,28) as block matmuls against pre-split, alpha/beta-
    # folded weight blocks: the 28-dim concat is never materialized.
    c = _leaky(jnp.dot(vp, w3a, preferred_element_type=jnp.float32)
               + jnp.dot(vc, w3b, preferred_element_type=jnp.float32)
               + jnp.dot(sm, w3s_ref[...], preferred_element_type=jnp.float32)
               + b3)
    out_ref[...] = _leaky(jnp.dot(c.astype(jnp.bfloat16), w4,
                                  preferred_element_type=jnp.float32) + b4)


# ---------------------------------------------------------------------------
# Parameter init (matches the PyTorch module: xavier_uniform_ weights,
# default Linear bias init, alpha = beta = 1).
# ---------------------------------------------------------------------------
def _xavier_uniform(key, fan_in, fan_out):
    limit = math.sqrt(6.0 / (fan_in + fan_out))
    return jax.random.uniform(key, (fan_in, fan_out), jnp.float32, -limit, limit)


def _linear_bias(key, fan_in, fan_out):
    bound = 1.0 / math.sqrt(fan_in)
    return jax.random.uniform(key, (fan_out,), jnp.float32, -bound, bound)


def init_params(seed=0):
    keys = jax.random.split(jax.random.PRNGKey(seed), 8)
    return {
        "alpha": jnp.ones((1,), jnp.float32),   # Variable(randn)*0 + 1
        "beta": jnp.ones((1,), jnp.float32),
        "w1": _xavier_uniform(keys[0], 121, 50), "b1": _linear_bias(keys[1], 121, 50),
        "w2": _xavier_uniform(keys[2], 50, 10),  "b2": _linear_bias(keys[3], 50, 10),
        "w3": _xavier_uniform(keys[4], 28, 28),  "b3": _linear_bias(keys[5], 28, 28),
        "w4": _xavier_uniform(keys[6], 28, 10),  "b4": _linear_bias(keys[7], 28, 10),
    }


def pack_weights(params):
    """Fold alpha/beta into the combined-layer blocks (exact: they are applied
    post-activation upstream) and quantize weights to bf16. Biases stay f32.
    NOTE: if params change, re-pack (otherwise the kernel uses stale folds)."""
    alpha = params["alpha"][0]
    beta = params["beta"][0]
    w1b = jnp.zeros((VIS_IN, LANES), jnp.float32)
    w1b = w1b.at[:, :50].set(params["w1"]).astype(jnp.bfloat16)

    wsq = jnp.zeros((4, LANES, LANES), jnp.float32)
    wsq = wsq.at[0, :50, :10].set(params["w2"])
    wsq = wsq.at[1, :10, :28].set(alpha * params["w3"][0:10])
    wsq = wsq.at[2, :10, :28].set(alpha * params["w3"][10:20])
    wsq = wsq.at[3, :28, :10].set(params["w4"])
    wsq = wsq.astype(jnp.bfloat16)

    w3s = jnp.zeros((SM_IN, LANES), jnp.float32)
    w3s = w3s.at[:6, :28].set(beta * params["w3"][20:26])
    w3s = w3s.at[6:8, :28].set(params["w3"][26:28])
    w3s = w3s.astype(jnp.bfloat16)

    bias = jnp.zeros((4, LANES), jnp.float32)
    bias = bias.at[0, :50].set(params["b1"])
    bias = bias.at[1, :10].set(params["b2"])
    bias = bias.at[2, :28].set(params["b3"])
    bias = bias.at[3, :10].set(params["b4"])
    return (w1b, wsq, w3s, bias)


# ---------------------------------------------------------------------------
# Wrappers
# ---------------------------------------------------------------------------
def _pair_tile(m):
    # >= 2 grid steps once m > 8 so the "parallel" axis shards across v7x's
    # two TensorCores; cap at 2048 pairs/tile (double-buffered working set
    # ~6 MiB f32 -- comfortably under the scoped-VMEM default on all gens).
    half = -(-m // 2)
    tm = 8 * (-(-half // 8))
    return max(8, min(2048, tm))


@jax.jit
def icm_features_padded(packed, prev_vision, prev_scent, prev_moved,
                        curr_vision, curr_scent, curr_moved):
    """Batched forward: M (prev, curr) pairs -> lane-dense (mp, 128) f32 slab.
    Rows 0:m, cols 0:10 are the real outputs; hand this slab to a fused
    consumer to avoid the post-kernel slice pass."""
    w1b, wsq, w3s, bias = packed
    m = prev_vision.shape[0]
    tm = _pair_tile(m)
    mp = tm * (-(-m // tm))

    def vis_rows(v):
        # permute(2, 0, 1) is a value no-op for C == 1, so flatten directly.
        x = v.reshape(m, VIS_IN).astype(jnp.float32)
        return jnp.pad(x, ((0, mp - m), (0, 0))) if mp != m else x

    sm = jnp.concatenate(
        [prev_scent.reshape(m, 3).astype(jnp.float32),
         curr_scent.reshape(m, 3).astype(jnp.float32),
         10.0 * prev_moved.reshape(m, 1).astype(jnp.float32),
         10.0 * curr_moved.reshape(m, 1).astype(jnp.float32)], axis=1)
    if mp != m:
        sm = jnp.pad(sm, ((0, mp - m), (0, 0)))

    return pl.pallas_call(
        icm_features_kernel,
        out_shape=jax.ShapeDtypeStruct((mp, LANES), jnp.float32),
        grid=(mp // tm,),
        in_specs=[
            pl.BlockSpec((tm, VIS_IN), lambda i: (i, 0)),
            pl.BlockSpec((tm, VIS_IN), lambda i: (i, 0)),
            pl.BlockSpec((tm, SM_IN), lambda i: (i, 0)),
            # constant-index weight/bias blocks: DMA'd once, reused every step.
            pl.BlockSpec((VIS_IN, LANES), lambda i: (0, 0)),
            pl.BlockSpec((4, LANES, LANES), lambda i: (0, 0, 0)),
            pl.BlockSpec((SM_IN, LANES), lambda i: (0, 0)),
            pl.BlockSpec((4, LANES), lambda i: (0, 0)),
        ],
        out_specs=pl.BlockSpec((tm, LANES), lambda i: (i, 0)),
        compiler_params=pltpu.CompilerParams(
            dimension_semantics=("parallel",)),
    )(vis_rows(prev_vision), vis_rows(curr_vision), sm, w1b, wsq, w3s, bias)


def icm_features_batched(packed, prev_vision, prev_scent, prev_moved,
                         curr_vision, curr_scent, curr_moved):
    """Convenience wrapper: (m, 10) outputs (slicing the padded slab costs one
    extra HBM pass; latency-critical consumers should use icm_features_padded)."""
    m = prev_vision.shape[0]
    out = icm_features_padded(packed, prev_vision, prev_scent, prev_moved,
                              curr_vision, curr_scent, curr_moved)
    return out[:m, :10]


def icm_features(params, prev_state, curr_state):
    """Single (prev, curr) pair -> (10,), matching the module's forward()."""
    packed = pack_weights(params)
    out = icm_features_batched(
        packed,
        prev_state["vision"][None], prev_state["scent"][None],
        jnp.asarray([prev_state["moved"]], dtype=jnp.float32),
        curr_state["vision"][None], curr_state["scent"][None],
        jnp.asarray([curr_state["moved"]], dtype=jnp.float32))
    return out[0]


# ---------------------------------------------------------------------------
# References (for checking)
# ---------------------------------------------------------------------------
def icm_features_reference(params, prev_state, curr_state):
    """Pure-f32 JAX reference of the intended forward pass."""
    hp = jax.lax.Precision.HIGHEST
    def vis(v):
        x = v.reshape(-1).astype(jnp.float32)
        h = _leaky(jnp.dot(x, params["w1"], precision=hp) + params["b1"])
        return _leaky(jnp.dot(h, params["w2"], precision=hp) + params["b2"])
    vp = params["alpha"][0] * vis(prev_state["vision"])
    vc = params["alpha"][0] * vis(curr_state["vision"])
    scent = params["beta"][0] * jnp.concatenate(
        [prev_state["scent"], curr_state["scent"]]).astype(jnp.float32)
    mov = jnp.array([10.0 * float(bool(prev_state["moved"])),
                     10.0 * float(bool(curr_state["moved"]))], jnp.float32)
    cat = jnp.concatenate([vp, vc, scent, mov])
    c = _leaky(jnp.dot(cat, params["w3"], precision=hp) + params["b3"])
    return _leaky(jnp.dot(c, params["w4"], precision=hp) + params["b4"])


def icm_features_reference_bf16(params, prev_state, curr_state):
    """Mirrors the kernel's bf16-operand / f32-accumulate rounding points."""
    hp = jax.lax.Precision.HIGHEST
    bf = lambda a: a.astype(jnp.bfloat16).astype(jnp.float32)
    def vis(v):
        x = bf(v.reshape(-1).astype(jnp.float32))
        h = _leaky(jnp.dot(x, bf(params["w1"]), precision=hp) + params["b1"])
        return _leaky(jnp.dot(bf(h), bf(params["w2"]), precision=hp) + params["b2"])
    vp, vc = vis(prev_state["vision"]), vis(curr_state["vision"])
    w3 = bf(params["w3"])
    sm = bf(jnp.concatenate(
        [prev_state["scent"], curr_state["scent"],
         jnp.array([10.0 * float(bool(prev_state["moved"])),
                    10.0 * float(bool(curr_state["moved"]))])]).astype(jnp.float32))
    c = _leaky(jnp.dot(bf(vp), w3[0:10], precision=hp)
               + jnp.dot(bf(vc), w3[10:20], precision=hp)
               + jnp.dot(sm, w3[20:28], precision=hp) + params["b3"])
    return _leaky(jnp.dot(bf(c), bf(params["w4"]), precision=hp) + params["b4"])


if __name__ == "__main__":
    key = jax.random.PRNGKey(0)
    k_pv, k_cv, k_ps, k_cs, k_bv, k_bs = jax.random.split(key, 6)

    prev_state = {"vision": jax.random.uniform(k_pv, (11, 11, 1), jnp.float32),
                  "scent": jax.random.uniform(k_ps, (3,), jnp.float32),
                  "moved": True}
    curr_state = {"vision": jax.random.uniform(k_cv, (11, 11, 1), jnp.float32),
                  "scent": jax.random.uniform(k_cs, (3,), jnp.float32),
                  "moved": False}

    params = init_params(seed=0)

    # single-pair path (module semantics): (10,) output
    out = jax.block_until_ready(icm_features(params, prev_state, curr_state))
    assert out.shape == (10,) and out.dtype == jnp.float32
    ref16 = icm_features_reference_bf16(params, prev_state, curr_state)
    ref32 = icm_features_reference(params, prev_state, curr_state)
    assert jnp.allclose(out, ref16, rtol=5e-3, atol=5e-3)
    assert jnp.allclose(out, ref32, rtol=5e-2, atol=5e-2)

    # small batched path (16 pairs -> 2 grid steps) -- the throughput entry point
    M = 16
    packed = pack_weights(params)
    pv = jax.random.uniform(k_bv, (M, 11, 11, 1), jnp.float32)
    cv = jax.random.uniform(k_bv, (M, 11, 11, 1), jnp.float32) * 0.5
    ps = jax.random.uniform(k_bs, (M, 3), jnp.float32)
    cs = jax.random.uniform(k_bs, (M, 3), jnp.float32) * 0.5
    pm = (jnp.arange(M) % 2) == 0
    cm = (jnp.arange(M) % 3) == 0
    outb = jax.block_until_ready(
        icm_features_batched(packed, pv, ps, pm, cv, cs, cm))
    assert outb.shape == (M, 10) and outb.dtype == jnp.float32
    i = 3
    refb = icm_features_reference_bf16(
        params,
        {"vision": pv[i], "scent": ps[i], "moved": bool(pm[i])},
        {"vision": cv[i], "scent": cs[i], "moved": bool(cm[i])})
    assert jnp.allclose(outb[i], refb, rtol=5e-3, atol=5e-3)

    print("KERNEL_OK")
</pallas_src>

<mosaic_0001>
module attributes {stable_mosaic.version = 11 : i64} {
  func.func @icm_features_kernel(%arg0: i32, %arg1: memref<8x121xf32, #tpu.memory_space<vmem>>, %arg2: memref<8x121xf32, #tpu.memory_space<vmem>>, %arg3: memref<8x8xf32, #tpu.memory_space<vmem>>, %arg4: memref<121x128xbf16, #tpu.memory_space<vmem>>, %arg5: memref<4x128x128xbf16, #tpu.memory_space<vmem>>, %arg6: memref<8x128xbf16, #tpu.memory_space<vmem>>, %arg7: memref<4x128xf32, #tpu.memory_space<vmem>>, %arg8: memref<8x128xf32, #tpu.memory_space<vmem>>) attributes {dimension_semantics = [#tpu.dimension_semantics<parallel>], iteration_bounds = array<i64: 1>, scalar_prefetch = 0 : i64, scratch_operands = 0 : i64, tpu.core_type = #tpu.core_type<tc>, window_params = [{transform_indices = @transform_0, window_bounds = array<i64: 8, 121>}, {transform_indices = @transform_1, window_bounds = array<i64: 8, 121>}, {transform_indices = @transform_2, window_bounds = array<i64: 8, 8>}, {pipeline_mode = #tpu.pipeline_mode<synchronous>, transform_indices = @transform_3, window_bounds = array<i64: 121, 128>}, {pipeline_mode = #tpu.pipeline_mode<synchronous>, transform_indices = @transform_4, window_bounds = array<i64: 4, 128, 128>}, {pipeline_mode = #tpu.pipeline_mode<synchronous>, transform_indices = @transform_5, window_bounds = array<i64: 8, 128>}, {pipeline_mode = #tpu.pipeline_mode<synchronous>, transform_indices = @transform_6, window_bounds = array<i64: 4, 128>}, {transform_indices = @transform_7, window_bounds = array<i64: 8, 128>}]} {
    %c0 = arith.constant 0 : index
    %c0_0 = arith.constant 0 : index
    %0 = vector.load %arg4[%c0, %c0_0] : memref<121x128xbf16, #tpu.memory_space<vmem>>, vector<121x128xbf16>
    %c0_1 = arith.constant 0 : index
    %c0_2 = arith.constant 0 : index
    %c0_3 = arith.constant 0 : index
    %1 = vector.load %arg5[%c0_1, %c0_2, %c0_3] : memref<4x128x128xbf16, #tpu.memory_space<vmem>>, vector<1x128x128xbf16>
    %2 = vector.shape_cast %1 : vector<1x128x128xbf16> to vector<128x128xbf16>
    %c1 = arith.constant 1 : index
    %c0_4 = arith.constant 0 : index
    %c0_5 = arith.constant 0 : index
    %3 = vector.load %arg5[%c1, %c0_4, %c0_5] : memref<4x128x128xbf16, #tpu.memory_space<vmem>>, vector<1x128x128xbf16>
    %4 = vector.shape_cast %3 : vector<1x128x128xbf16> to vector<128x128xbf16>
    %c2 = arith.constant 2 : index
    %c0_6 = arith.constant 0 : index
    %c0_7 = arith.constant 0 : index
    %5 = vector.load %arg5[%c2, %c0_6, %c0_7] : memref<4x128x128xbf16, #tpu.memory_space<vmem>>, vector<1x128x128xbf16>
    %6 = vector.shape_cast %5 : vector<1x128x128xbf16> to vector<128x128xbf16>
    %c3 = arith.constant 3 : index
    %c0_8 = arith.constant 0 : index
    %c0_9 = arith.constant 0 : index
    %7 = vector.load %arg5[%c3, %c0_8, %c0_9] : memref<4x128x128xbf16, #tpu.memory_space<vmem>>, vector<1x128x128xbf16>
    %8 = vector.shape_cast %7 : vector<1x128x128xbf16> to vector<128x128xbf16>
    %c0_10 = arith.constant 0 : index
    %c0_11 = arith.constant 0 : index
    %9 = vector.load %arg7[%c0_10, %c0_11] : memref<4x128xf32, #tpu.memory_space<vmem>>, vector<1x128xf32>
    %c1_12 = arith.constant 1 : index
    %c0_13 = arith.constant 0 : index
    %10 = vector.load %arg7[%c1_12, %c0_13] : memref<4x128xf32, #tpu.memory_space<vmem>>, vector<1x128xf32>
    %c2_14 = arith.constant 2 : index
    %c0_15 = arith.constant 0 : index
    %11 = vector.load %arg7[%c2_14, %c0_15] : memref<4x128xf32, #tpu.memory_space<vmem>>, vector<1x128xf32>
    %c3_16 = arith.constant 3 : index
    %c0_17 = arith.constant 0 : index
    %12 = vector.load %arg7[%c3_16, %c0_17] : memref<4x128xf32, #tpu.memory_space<vmem>>, vector<1x128xf32>
    %c0_18 = arith.constant 0 : index
    %c0_19 = arith.constant 0 : index
    %13 = vector.load %arg1[%c0_18, %c0_19] : memref<8x121xf32, #tpu.memory_space<vmem>>, vector<8x121xf32>
    %14 = arith.truncf %13 : vector<8x121xf32> to vector<8x121xbf16>
    %cst = arith.constant dense<0.000000e+00> : vector<8x128xf32>
    %15 = tpu.matmul %14, %0, %cst {dimension_numbers = #tpu.dot_dimension_numbers<[1], [0], [0], [1], [0, 0, 1, 1], [], []>} : vector<8x121xbf16>, vector<121x128xbf16>, vector<8x128xf32> -> vector<8x128xf32>
    %16 = vector.broadcast %9 : vector<1x128xf32> to vector<8x128xf32>
    %17 = arith.addf %15, %16 : vector<8x128xf32>
    %cst_20 = arith.constant 0.000000e+00 : f32
    %18 = vector.broadcast %cst_20 : f32 to vector<8x128xf32>
    %19 = arith.cmpf ogt, %17, %18 : vector<8x128xf32>
    %cst_21 = arith.constant 0.00999999977 : f32
    %20 = vector.broadcast %cst_21 : f32 to vector<8x128xf32>
    %21 = arith.mulf %20, %17 : vector<8x128xf32>
    %22 = arith.select %19, %17, %21 : vector<8x128xi1>, vector<8x128xf32>
    %23 = arith.truncf %22 : vector<8x128xf32> to vector<8x128xbf16>
    %cst_22 = arith.constant dense<0.000000e+00> : vector<8x128xf32>
    %24 = tpu.matmul %23, %2, %cst_22 {dimension_numbers = #tpu.dot_dimension_numbers<[1], [0], [0], [1], [0, 0, 1, 1], [], []>} : vector<8x128xbf16>, vector<128x128xbf16>, vector<8x128xf32> -> vector<8x128xf32>
    %25 = vector.broadcast %10 : vector<1x128xf32> to vector<8x128xf32>
    %26 = arith.addf %24, %25 : vector<8x128xf32>
    %cst_23 = arith.constant 0.000000e+00 : f32
    %27 = vector.broadcast %cst_23 : f32 to vector<8x128xf32>
    %28 = arith.cmpf ogt, %26, %27 : vector<8x128xf32>
    %cst_24 = arith.constant 0.00999999977 : f32
    %29 = vector.broadcast %cst_24 : f32 to vector<8x128xf32>
    %30 = arith.mulf %29, %26 : vector<8x128xf32>
    %31 = arith.select %28, %26, %30 : vector<8x128xi1>, vector<8x128xf32>
    %32 = arith.truncf %31 : vector<8x128xf32> to vector<8x128xbf16>
    %c0_25 = arith.constant 0 : index
    %c0_26 = arith.constant 0 : index
    %33 = vector.load %arg2[%c0_25, %c0_26] : memref<8x121xf32, #tpu.memory_space<vmem>>, vector<8x121xf32>
    %34 = arith.truncf %33 : vector<8x121xf32> to vector<8x121xbf16>
    %cst_27 = arith.constant dense<0.000000e+00> : vector<8x128xf32>
    %35 = tpu.matmul %34, %0, %cst_27 {dimension_numbers = #tpu.dot_dimension_numbers<[1], [0], [0], [1], [0, 0, 1, 1], [], []>} : vector<8x121xbf16>, vector<121x128xbf16>, vector<8x128xf32> -> vector<8x128xf32>
    %36 = vector.broadcast %9 : vector<1x128xf32> to vector<8x128xf32>
    %37 = arith.addf %35, %36 : vector<8x128xf32>
    %cst_28 = arith.constant 0.000000e+00 : f32
    %38 = vector.broadcast %cst_28 : f32 to vector<8x128xf32>
    %39 = arith.cmpf ogt, %37, %38 : vector<8x128xf32>
    %cst_29 = arith.constant 0.00999999977 : f32
    %40 = vector.broadcast %cst_29 : f32 to vector<8x128xf32>
    %41 = arith.mulf %40, %37 : vector<8x128xf32>
    %42 = arith.select %39, %37, %41 : vector<8x128xi1>, vector<8x128xf32>
    %43 = arith.truncf %42 : vector<8x128xf32> to vector<8x128xbf16>
    %cst_30 = arith.constant dense<0.000000e+00> : vector<8x128xf32>
    %44 = tpu.matmul %43, %2, %cst_30 {dimension_numbers = #tpu.dot_dimension_numbers<[1], [0], [0], [1], [0, 0, 1, 1], [], []>} : vector<8x128xbf16>, vector<128x128xbf16>, vector<8x128xf32> -> vector<8x128xf32>
    %45 = vector.broadcast %10 : vector<1x128xf32> to vector<8x128xf32>
    %46 = arith.addf %44, %45 : vector<8x128xf32>
    %cst_31 = arith.constant 0.000000e+00 : f32
    %47 = vector.broadcast %cst_31 : f32 to vector<8x128xf32>
    %48 = arith.cmpf ogt, %46, %47 : vector<8x128xf32>
    %cst_32 = arith.constant 0.00999999977 : f32
    %49 = vector.broadcast %cst_32 : f32 to vector<8x128xf32>
    %50 = arith.mulf %49, %46 : vector<8x128xf32>
    %51 = arith.select %48, %46, %50 : vector<8x128xi1>, vector<8x128xf32>
    %52 = arith.truncf %51 : vector<8x128xf32> to vector<8x128xbf16>
    %c0_33 = arith.constant 0 : index
    %c0_34 = arith.constant 0 : index
    %53 = vector.load %arg3[%c0_33, %c0_34] : memref<8x8xf32, #tpu.memory_space<vmem>>, vector<8x8xf32>
    %54 = arith.truncf %53 : vector<8x8xf32> to vector<8x8xbf16>
    %cst_35 = arith.constant dense<0.000000e+00> : vector<8x128xf32>
    %55 = tpu.matmul %32, %4, %cst_35 {dimension_numbers = #tpu.dot_dimension_numbers<[1], [0], [0], [1], [0, 0, 1, 1], [], []>} : vector<8x128xbf16>, vector<128x128xbf16>, vector<8x128xf32> -> vector<8x128xf32>
    %cst_36 = arith.constant dense<0.000000e+00> : vector<8x128xf32>
    %56 = tpu.matmul %52, %6, %cst_36 {dimension_numbers = #tpu.dot_dimension_numbers<[1], [0], [0], [1], [0, 0, 1, 1], [], []>} : vector<8x128xbf16>, vector<128x128xbf16>, vector<8x128xf32> -> vector<8x128xf32>
    %57 = arith.addf %55, %56 : vector<8x128xf32>
    %c0_37 = arith.constant 0 : index
    %c0_38 = arith.constant 0 : index
    %58 = vector.load %arg6[%c0_37, %c0_38] : memref<8x128xbf16, #tpu.memory_space<vmem>>, vector<8x128xbf16>
    %cst_39 = arith.constant dense<0.000000e+00> : vector<8x128xf32>
    %59 = tpu.matmul %54, %58, %cst_39 {dimension_numbers = #tpu.dot_dimension_numbers<[1], [0], [0], [1], [0, 0, 1, 1], [], []>} : vector<8x8xbf16>, vector<8x128xbf16>, vector<8x128xf32> -> vector<8x128xf32>
    %60 = arith.addf %57, %59 : vector<8x128xf32>
    %61 = vector.broadcast %11 : vector<1x128xf32> to vector<8x128xf32>
    %62 = arith.addf %60, %61 : vector<8x128xf32>
    %cst_40 = arith.constant 0.000000e+00 : f32
    %63 = vector.broadcast %cst_40 : f32 to vector<8x128xf32>
    %64 = arith.cmpf ogt, %62, %63 : vector<8x128xf32>
    %cst_41 = arith.constant 0.00999999977 : f32
    %65 = vector.broadcast %cst_41 : f32 to vector<8x128xf32>
    %66 = arith.mulf %65, %62 : vector<8x128xf32>
    %67 = arith.select %64, %62, %66 : vector<8x128xi1>, vector<8x128xf32>
    %68 = arith.truncf %67 : vector<8x128xf32> to vector<8x128xbf16>
    %cst_42 = arith.constant dense<0.000000e+00> : vector<8x128xf32>
    %69 = tpu.matmul %68, %8, %cst_42 {dimension_numbers = #tpu.dot_dimension_numbers<[1], [0], [0], [1], [0, 0, 1, 1], [], []>} : vector<8x128xbf16>, vector<128x128xbf16>, vector<8x128xf32> -> vector<8x128xf32>
    %70 = vector.broadcast %12 : vector<1x128xf32> to vector<8x128xf32>
    %71 = arith.addf %69, %70 : vector<8x128xf32>
    %cst_43 = arith.constant 0.000000e+00 : f32
    %72 = vector.broadcast %cst_43 : f32 to vector<8x128xf32>
    %73 = arith.cmpf ogt, %71, %72 : vector<8x128xf32>
    %cst_44 = arith.constant 0.00999999977 : f32
    %74 = vector.broadcast %cst_44 : f32 to vector<8x128xf32>
    %75 = arith.mulf %74, %71 : vector<8x128xf32>
    %76 = arith.select %73, %71, %75 : vector<8x128xi1>, vector<8x128xf32>
    %c0_45 = arith.constant 0 : index
    %c0_46 = arith.constant 0 : index
    %77 = vector.load %arg8[%c0_45, %c0_46] : memref<8x128xf32, #tpu.memory_space<vmem>>, vector<8x128xf32>
    tpu.vector_store %arg8[%c0_45, %c0_46], %76 {strides = array<i32>} : memref<8x128xf32, #tpu.memory_space<vmem>>, vector<8x128xf32>,
    return
  }
  func.func @transform_0(%arg0: i32) -> (i32, i32) {
    %c0_i32 = arith.constant 0 : i32
    %c0_i32_0 = arith.constant 0 : i32
    return %arg0, %c0_i32 : i32, i32
  }
  func.func @transform_1(%arg0: i32) -> (i32, i32) {
    %c0_i32 = arith.constant 0 : i32
    %c0_i32_0 = arith.constant 0 : i32
    return %arg0, %c0_i32 : i32, i32
  }
  func.func @transform_2(%arg0: i32) -> (i32, i32) {
    %c0_i32 = arith.constant 0 : i32
    %c0_i32_0 = arith.constant 0 : i32
    return %arg0, %c0_i32 : i32, i32
  }
  func.func @transform_3(%arg0: i32) -> (i32, i32) {
    %c0_i32 = arith.constant 0 : i32
    %c0_i32_0 = arith.constant 0 : i32
    %c0_i32_1 = arith.constant 0 : i32
    return %c0_i32, %c0_i32_0 : i32, i32
  }
  func.func @transform_4(%arg0: i32) -> (i32, i32, i32) {
    %c0_i32 = arith.constant 0 : i32
    %c0_i32_0 = arith.constant 0 : i32
    %c0_i32_1 = arith.constant 0 : i32
    %c0_i32_2 = arith.constant 0 : i32
    return %c0_i32, %c0_i32_0, %c0_i32_1 : i32, i32, i32
  }
  func.func @transform_5(%arg0: i32) -> (i32, i32) {
    %c0_i32 = arith.constant 0 : i32
    %c0_i32_0 = arith.constant 0 : i32
    %c0_i32_1 = arith.constant 0 : i32
    return %c0_i32, %c0_i32_0 : i32, i32
  }
  func.func @transform_6(%arg0: i32) -> (i32, i32) {
    %c0_i32 = arith.constant 0 : i32
    %c0_i32_0 = arith.constant 0 : i32
    %c0_i32_1 = arith.constant 0 : i32
    return %c0_i32, %c0_i32_0 : i32, i32
  }
  func.func @transform_7(%arg0: i32) -> (i32, i32) {
    %c0_i32 = arith.constant 0 : i32
    %c0_i32_0 = arith.constant 0 : i32
    return %arg0, %c0_i32 : i32, i32
  }
}

</mosaic_0001>

<bundles_post_ra>
// kernel: icm_features_padded.1
= control target key start
LH: loop header
LB: loop body
LE: loop exit
PB: predicated region body
PF: predicated region fallthrough
CT: control target
= control target key end

     0   :  { %12 = vsyncpa [#allocation3], 0  ;;  %s1342_s0 = inlined_call_operand.vmem [shape: f32[8,121], index: 0, kind: input, shape index: {}]   ;;  %s1343_s1 = inlined_call_operand.vmem [shape: f32[8,121], index: 1, kind: input, shape index: {}]   ;;  %s1344_s2 = inlined_call_operand.vmem [shape: f32[8,8], index: 2, kind: input, shape index: {}]   ;;  %s1345_s3 = inlined_call_operand.vmem [shape: bf16[121,128], index: 3, kind: input, shape index: {}]   ;;  %s1346_s4 = inlined_call_operand.hbm [shape: bf16[4,128,128], index: 4, kind: input, shape index: {}]   ;;  %s1347_s5 = inlined_call_operand.vmem [shape: bf16[8,128], index: 5, kind: input, shape index: {}]   ;;  %s1348_s6 = inlined_call_operand.vmem [shape: f32[4,128], index: 6, kind: input, shape index: {}]   ;;  %s1349_s7 = inlined_call_operand.hbm [shape: f32[8,128], index: 7, kind: output, shape index: {}]  }
   0x1   :  { %13 = vsyncpa [#allocation4], 0  ;;  %s1126_s24 = smov [#allocation2]   ;;  %s1078_s28 = scalar_lea.hbm %s1346_s4, 4096 }
   0x2   :  { %s27_s25 = sshll.u32 %s1126_s24, 4  ;;  %p1079_p0 = scmp.ne.s32.totalorder %s1346_s4, %s1078_s28  ;;  %s28_s25 = int_to_ptr.vmem [resolvable:$true] %s27_s25 }
   0x3   :  { %p1082_p1 = scmp.lt.u32.totalorder %s1078_s28, %s1346_s4 }
   0x5   :  { %p1084_p2 = pnand %p1082_p1, %p1079_p0 }
   0x7   :  { %1087 = shalt.err (!%p1084_p2)
}
   0x8   :  { %s1088_s10 = scalar_lea.vmem %s28_s25, 4096  ;;  %p1093_p4 = scmp.lt.s32.totalorder %s28_s25, %s28_s25 }
   0x9   :  { %p1089_p3 = scmp.ne.s32.totalorder %s28_s25, %s1088_s10  ;;  %p1094_p5 = scmp.lt.s32.totalorder %s1088_s10, %s1088_s10 }
   0xb   :  { %p1095_p6 = por %p1094_p5, %p1093_p4 }
   0xd   :  { %p1096_p7 = pnand %p1095_p6, %p1089_p3 }
   0xf   :  { %1099 = shalt.err (!%p1096_p7)
}
  0x10   :  { %s1127_s11 = smov 64   ;;  %s1128_s12 = smov 4  }
  0x11   :  { %33 = dma.hbm_to_vmem [thread:$0]  %s1346_s4, 4096, %s28_s25, [#allocation3], %s1127_s11, %s1127_s11, %s1128_s12  }
  0x12   :  { %1122 = dma.done.wait [#allocation3], 4096  }
  0x13   :  { %1123 = vsyncadd [#allocation3], 4294963200  ;;  %v1129_v0 = vmov 0.0   ;;  %vm1130_vm0 = vmmov 0   ;;  %v1038_v1 = vld [vmem:[%s1345_s3] sm:$0xff]   ;;  %v1039_v2 = vld [vmem:[%s1345_s3 + $0x8] sm:$0xff]  }
  0x14   :  { %885 = vmatprep.subr.bf16.mxu0 %v1129_v0  ;;  %905 = vmatprep.subr.bf16.mxu1 %v1129_v0  ;;  %v1040_v3 = vld [vmem:[%s1345_s3 + $0x10] sm:$0xff]   ;;  %vm186_vm1 = vcmask 1043456   ;;  %v1202_v4 = vld [vmem:[#allocation2] sm:$0xff]   ;;  %v1041_v5 = vld [vmem:[%s1345_s3 + $0x18] sm:$0xff]   ;;  %vm187_vm2 = vcmask 1044480   ;;  %v1131_v6 = vmov 65535  }
  0x15   :  { %901 = vmatprep.mubr.msk.bf16.mxu0 %vm1130_vm0, %v1129_v0  ;;  %921 = vmatprep.mubr.msk.bf16.mxu1 %vm1130_vm0, %v1129_v0  ;;  %v188_v7 = vsel %vm186_vm1, 4294967295, %v1131_v6  ;;  %v1210_v8 = vld [vmem:[#allocation2 + $0x8] sm:$0xff]   ;;  %v1042_v9 = vld [vmem:[%s1345_s3 + $0x20] sm:$0xff]   ;;  %v1216_v11 = vld [vmem:[#allocation2 + $0x10] sm:$0xff]   ;;  %vm182_vm3 = vcmask 990208   ;;  %vm605_vm8 = vcmask 64512  }
  0x16   :  { %886 = vmatpush3.bf16.msra.mxu0 %v1038_v1  ;;  %906 = vmatpush3.bf16.msra.mxu1 %v1202_v4  ;;  %v189_v10 = vsel %vm187_vm2, %v188_v7, 0  ;;  %v1043_v12 = vld [vmem:[%s1345_s3 + $0x28] sm:$0xff]   ;;  %v1224_v13 = vld [vmem:[#allocation2 + $0x18] sm:$0xff]   ;;  %v1044_v14 = vld [vmem:[%s1345_s3 + $0x30] sm:$0xff]   ;;  %s1132_s17 = smov [#allocation5]  }
  0x17   :  { %887 = vmatprep.subr.bf16.mxu0 %v1129_v0  ;;  %907 = vmatprep.subr.bf16.mxu1 %v1129_v0  ;;  %v1045_v15 = vld [vmem:[%s1345_s3 + $0x38] sm:$0x1f]   ;;  %v1235_v16 = vld [vmem:[#allocation2 + $0x20] sm:$0xff]   ;;  %v1051_v18 = vld [vmem:[#allocation2 + $0x28] sm:$0xff]   ;;  %s764_s18 = sshll.u32 %s1132_s17, 4  ;;  %s765_s18 = int_to_ptr.vmem [resolvable:$true] %s764_s18 }
  0x18   :  { %v129_v17 = vld [vmem:[%s1342_s0] sm:$0xff]  ;;  %v191_v19 = vand.u32 %v1045_v15, %v189_v10  ;;  %v1052_v23 = vld [vmem:[#allocation2 + $0x30] sm:$0xff]   ;;  %v1053_v24 = vld [vmem:[#allocation2 + $0x38] sm:$0xff]   ;;  %s1100_s19 = scalar_lea.vmem %s765_s18, 128  ;;  %p1105_p9 = scmp.lt.s32.totalorder %s765_s18, %s765_s18 }
  0x19   :  { %v130_v20 = vpack.c.bf16 %v129_v17, %v129_v17  ;;  %v333_v21 = vld [vmem:[%s1343_s1] sm:$0xff]  ;;  %v1055_v43 = vld [vmem:[#allocation2 + $0x48] sm:$0xff]   ;;  %v1056_v44 = vld [vmem:[#allocation2 + $0x50] sm:$0xff]   ;;  %p1101_p8 = scmp.ne.s32.totalorder %s765_s18, %s1100_s19  ;;  %p1106_p10 = scmp.lt.s32.totalorder %s1100_s19, %s1100_s19 }
  0x1a   :  { %888 = vmatpush3.bf16.msra.mxu0 %v1039_v2  ;;  %908 = vmatpush3.bf16.msra.mxu1 %v1210_v8  ;;  %v334_v22 = vpack.c.bf16 %v333_v21, %v333_v21  ;;  %v773_v25 = vld [vmem:[%s1348_s6] ss:$0 sm:$0xff]  ;;  %v1057_v45 = vld [vmem:[#allocation2 + $0x58] sm:$0xff]   ;;  %v1059_v47 = vld [vmem:[#allocation2 + $0x68] sm:$0xff]  }
  0x1b   :  { %889 = vmatprep.subr.bf16.mxu0 %v1129_v0  ;;  %909 = vmatprep.subr.bf16.mxu1 %v1129_v0  ;;  %v1054_v41 = vld [vmem:[#allocation2 + $0x40] sm:$0xff]   ;;  %v1060_v48 = vld [vmem:[#allocation2 + $0x70] sm:$0xff]   ;;  %v1061_v49 = vld [vmem:[#allocation2 + $0x78] sm:$0xff]   ;;  %p1107_p11 = por %p1106_p10, %p1105_p9 }
  0x1c   :  { %v1058_v46 = vld [vmem:[#allocation2 + $0x60] sm:$0xff]   ;;  %v1063_v51 = vld [vmem:[#allocation2 + $0x88] sm:$0xff]   ;;  %v1064_v52 = vld [vmem:[#allocation2 + $0x90] sm:$0xff]  }
  0x1d   :  { %v1062_v50 = vld [vmem:[#allocation2 + $0x80] sm:$0xff]   ;;  %v1065_v53 = vld [vmem:[#allocation2 + $0x98] sm:$0xff]   ;;  %v1067_v55 = vld [vmem:[#allocation2 + $0xa8] sm:$0xff]   ;;  %p1108_p12 = pnand %p1107_p11, %p1101_p8 }
  0x1e   :  { %890 = vmatpush3.bf16.msra.mxu0 %v1040_v3  ;;  %910 = vmatpush3.bf16.msra.mxu1 %v1216_v11  ;;  %v1066_v54 = vld [vmem:[#allocation2 + $0xa0] sm:$0xff]   ;;  %v1068_v56 = vld [vmem:[#allocation2 + $0xb0] sm:$0xff]   ;;  %v1069_v57 = vld [vmem:[#allocation2 + $0xb8] sm:$0xff]  }
  0x1f   :  { %891 = vmatprep.subr.bf16.mxu0 %v1129_v0  ;;  %911 = vmatprep.subr.bf16.mxu1 %v1129_v0  ;;  %v783_v58 = vld [vmem:[%s1348_s6 + $0x1] ss:$0 sm:$0xff]  ;;  %v1071_v17 = vld [vmem:[#allocation2 + $0xc8] sm:$0xff]  }
  0x20   :  { %v604_v10 = vld [vmem:[%s1347_s5] sm:$0xf]  ;;  %v1075_v21 = vld [vmem:[#allocation2 + $0xe8] sm:$0xff]  }
  0x22   :  { %892 = vmatpush3.bf16.msra.mxu0 %v1041_v5  ;;  %912 = vmatpush3.bf16.msra.mxu1 %v1224_v13 }
  0x23   :  { %893 = vmatprep.subr.bf16.mxu0 %v1129_v0  ;;  %913 = vmatprep.subr.bf16.mxu1 %v1129_v0 }
  0x26   :  { %894 = vmatpush3.bf16.msra.mxu0 %v1042_v9  ;;  %914 = vmatpush3.bf16.msra.mxu1 %v1235_v16 }
  0x27   :  { %895 = vmatprep.subr.bf16.mxu0 %v1129_v0  ;;  %915 = vmatprep.subr.bf16.mxu1 %v1129_v0 }
  0x2a   :  { %896 = vmatpush3.bf16.msra.mxu0 %v1043_v12  ;;  %916 = vmatpush3.bf16.msra.mxu1 %v1051_v18 }
  0x2b   :  { %897 = vmatprep.subr.bf16.mxu0 %v1129_v0  ;;  %917 = vmatprep.subr.bf16.mxu1 %v1129_v0 }
  0x2e   :  { %898 = vmatpush3.bf16.msra.mxu0 %v1044_v14  ;;  %918 = vmatpush3.bf16.msra.mxu1 %v1052_v23 }
  0x2f   :  { %899 = vmatprep.subr.bf16.mxu0 %v1129_v0  ;;  %919 = vmatprep.subr.bf16.mxu1 %v1129_v0 }
  0x32   :  { %900 = vmatpush3.bf16.msra.mxu0 %v191_v19  ;;  %920 = vmatpush3.bf16.msra.mxu1 %v1053_v24 }
  0x33   :  { %925 = vmatprep.subr.bf16.mxu0 %v1129_v0  ;;  %945 = vmatprep.subr.bf16.mxu1 %v1129_v0 }
  0x35   :  { %902 = vmatmul.mubr.msk.bf16.vlgmr.msra.gmra.mrb[0].mxu0 %vm182_vm3, %v130_v20  ;;  %v1074_v20 = vld [vmem:[#allocation2 + $0xe0] sm:$0xff]  }
  0x36   :  { %926 = vmatpush3.bf16.msra.mxu0 %v1038_v1  ;;  %941 = vmatprep.mubr.msk.bf16.mxu0 %vm1130_vm0, %v1129_v0 }
  0x37   :  { %927 = vmatprep.subr.bf16.mxu0 %v1129_v0 }
  0x3a   :  { %928 = vmatpush3.bf16.msra.mxu0 %v1039_v2 }
  0x3b   :  { %929 = vmatprep.subr.bf16.mxu0 %v1129_v0 }
  0x3e   :  { %930 = vmatpush3.bf16.msra.mxu0 %v1040_v3 }
  0x3f   :  { %931 = vmatprep.subr.bf16.mxu0 %v1129_v0 }
  0x42   :  { %932 = vmatpush3.bf16.msra.mxu0 %v1041_v5 }
  0x43   :  { %933 = vmatprep.subr.bf16.mxu0 %v1129_v0 }
  0x46   :  { %934 = vmatpush3.bf16.msra.mxu0 %v1042_v9 }
  0x47   :  { %935 = vmatprep.subr.bf16.mxu0 %v1129_v0 }
  0x4a   :  { %936 = vmatpush3.bf16.msra.mxu0 %v1043_v12 }
  0x4b   :  { %937 = vmatprep.subr.bf16.mxu0 %v1129_v0 }
  0x4e   :  { %938 = vmatpush3.bf16.msra.mxu0 %v1044_v14  ;;  %v426_v14 = vld [vmem:[%s1344_s2] sm:$0xff] }
  0x4f   :  { %939 = vmatprep.subr.bf16.mxu0 %v1129_v0  ;;  %v427_v15 = vpack.c.bf16 %v426_v14, %v426_v14 }
  0x52   :  { %940 = vmatpush3.bf16.msra.mxu0 %v191_v19  ;;  %v1073_v19 = vld [vmem:[#allocation2 + $0xd8] sm:$0xff]  }
  0x53   :  { %965 = vmatprep.subr.bf16.mxu0 %v1129_v0 }
  0x55   :  { %942 = vmatmul.mubr.msk.bf16.vlgmr.msra.gmra.mrb[4].mxu0 %vm182_vm3, %v334_v22  ;;  %v1076_v22 = vld [vmem:[#allocation2 + $0xf0] sm:$0xff]  }
  0x56   :  { %981 = vmatprep.mubr.msk.bf16.mxu0 %vm1130_vm0, %v1129_v0  ;;  %966 = vmatpush3.bf16.msra.mxu0 %v1062_v50 }
  0x57   :  { %967 = vmatprep.subr.bf16.mxu0 %v1129_v0 }
  0x5a   :  { %968 = vmatpush3.bf16.msra.mxu0 %v1063_v51 }
  0x5b   :  { %969 = vmatprep.subr.bf16.mxu0 %v1129_v0 }
  0x5e   :  { %970 = vmatpush3.bf16.msra.mxu0 %v1064_v52 }
  0x5f   :  { %971 = vmatprep.subr.bf16.mxu0 %v1129_v0 }
  0x62   :  { %972 = vmatpush3.bf16.msra.mxu0 %v1065_v53 }
  0x63   :  { %973 = vmatprep.subr.bf16.mxu0 %v1129_v0 }
  0x66   :  { %974 = vmatpush3.bf16.msra.mxu0 %v1066_v54 }
  0x67   :  { %975 = vmatprep.subr.bf16.mxu0 %v1129_v0 }
  0x6a   :  { %976 = vmatpush3.bf16.msra.mxu0 %v1067_v55 }
  0x6b   :  { %977 = vmatprep.subr.bf16.mxu0 %v1129_v0 }
  0x6e   :  { %978 = vmatpush3.bf16.msra.mxu0 %v1068_v56 }
  0x6f   :  { %979 = vmatprep.subr.bf16.mxu0 %v1129_v0 }
  0x72   :  { %980 = vmatpush3.bf16.msra.mxu0 %v1069_v57 }
  0x73   :  { %1005 = vmatprep.subr.bf16.mxu0 %v1129_v0 }
 0x108   :  { %v227_v26 = vpop.f32.mrb[0].mxu0 }
 0x109   :  { %v228_v27 = vadd.f32 %v773_v25, %v227_v26  ;;  %v903_v28 = vpop.f32.mrb[1].mxu0 }
 0x10a   :  { %v230_v29 = vpop.f32.mrb[2].mxu0 }
 0x10b   :  { %vm233_vm4 = vcmp.gt.f32.partialorder %v228_v27, 0.0  ;;  %v234_v30 = vmul.f32 0.01, %v228_v27  ;;  %v904_v31 = vpop.f32.mrb[3].mxu0 }
 0x10d   :  { %v235_v32 = vsel %vm233_vm4, %v228_v27, %v234_v30 }
 0x10e   :  { %v236_v33 = vpack.c.bf16 %v235_v32, %v235_v32 }
 0x110   :  { %922 = vmatmul.mubr.bf16.vlgmr.msra.gmra.mrb[0].mxu1 %v236_v33  ;;  %v810_v33 = vld [vmem:[%s1348_s6 + $0x2] ss:$0 sm:$0xff] }
 0x111   :  { %946 = vmatpush3.bf16.msra.mxu1 %v1202_v4  ;;  %961 = vmatprep.mubr.msk.bf16.mxu1 %vm1130_vm0, %v1129_v0 }
 0x112   :  { %947 = vmatprep.subr.bf16.mxu1 %v1129_v0 }
 0x115   :  { %948 = vmatpush3.bf16.msra.mxu1 %v1210_v8 }
 0x116   :  { %949 = vmatprep.subr.bf16.mxu1 %v1129_v0 }
 0x119   :  { %950 = vmatpush3.bf16.msra.mxu1 %v1216_v11 }
 0x11a   :  { %951 = vmatprep.subr.bf16.mxu1 %v1129_v0 }
 0x11d   :  { %952 = vmatpush3.bf16.msra.mxu1 %v1224_v13  ;;  %v610_v13 = vsel %vm186_vm1, %v604_v10, 0 }
 0x11e   :  { %953 = vmatprep.subr.bf16.mxu1 %v1129_v0 }
 0x121   :  { %954 = vmatpush3.bf16.msra.mxu1 %v1235_v16  ;;  %v1070_v16 = vld [vmem:[#allocation2 + $0xc0] sm:$0xff]  }
 0x122   :  { %955 = vmatprep.subr.bf16.mxu1 %v1129_v0 }
 0x125   :  { %956 = vmatpush3.bf16.msra.mxu1 %v1051_v18  ;;  %v1072_v18 = vld [vmem:[#allocation2 + $0xd0] sm:$0xff]  }
 0x126   :  { %957 = vmatprep.subr.bf16.mxu1 %v1129_v0 }
 0x128   :  { %v372_v34 = vpop.f32.mrb[4].mxu0 }
 0x129   :  { %v373_v35 = vadd.f32 %v773_v25, %v372_v34  ;;  %v943_v36 = vpop.f32.mrb[5].mxu0  ;;  %958 = vmatpush3.bf16.msra.mxu1 %v1052_v23  ;;  %v1077_v23 = vld [vmem:[#allocation2 + $0xf8] sm:$0xff]  }
 0x12a   :  { %v375_v37 = vpop.f32.mrb[6].mxu0  ;;  %959 = vmatprep.subr.bf16.mxu1 %v1129_v0 }
 0x12b   :  { %vm378_vm5 = vcmp.gt.f32.partialorder %v373_v35, 0.0  ;;  %v379_v38 = vmul.f32 0.01, %v373_v35  ;;  %v944_v39 = vpop.f32.mrb[7].mxu0 }
 0x12d   :  { %v380_v40 = vsel %vm378_vm5, %v373_v35, %v379_v38  ;;  %960 = vmatpush3.bf16.msra.mxu1 %v1053_v24 }
 0x12e   :  { %v381_v42 = vpack.c.bf16 %v380_v40, %v380_v40  ;;  %985 = vmatprep.subr.bf16.mxu1 %v1129_v0 }
 0x130   :  { %962 = vmatmul.mubr.bf16.vlgmr.msra.gmra.mrb[4].mxu1 %v381_v42  ;;  %v811_v42 = vld [vmem:[%s1348_s6 + $0x3] ss:$0 sm:$0xff] }
 0x131   :  { %986 = vmatpush3.bf16.msra.mxu1 %v1054_v41  ;;  %1001 = vmatprep.mubr.msk.bf16.mxu1 %vm1130_vm0, %v1129_v0 }
 0x132   :  { %987 = vmatprep.subr.bf16.mxu1 %v1129_v0 }
 0x135   :  { %988 = vmatpush3.bf16.msra.mxu1 %v1055_v43 }
 0x136   :  { %989 = vmatprep.subr.bf16.mxu1 %v1129_v0 }
 0x139   :  { %990 = vmatpush3.bf16.msra.mxu1 %v1056_v44 }
 0x13a   :  { %991 = vmatprep.subr.bf16.mxu1 %v1129_v0 }
 0x13d   :  { %992 = vmatpush3.bf16.msra.mxu1 %v1057_v45 }
 0x13e   :  { %993 = vmatprep.subr.bf16.mxu1 %v1129_v0 }
 0x141   :  { %994 = vmatpush3.bf16.msra.mxu1 %v1058_v46 }
 0x142   :  { %995 = vmatprep.subr.bf16.mxu1 %v1129_v0 }
 0x145   :  { %996 = vmatpush3.bf16.msra.mxu1 %v1059_v47 }
 0x146   :  { %997 = vmatprep.subr.bf16.mxu1 %v1129_v0 }
 0x149   :  { %998 = vmatpush3.bf16.msra.mxu1 %v1060_v48 }
 0x14a   :  { %999 = vmatprep.subr.bf16.mxu1 %v1129_v0 }
 0x14d   :  { %1000 = vmatpush3.bf16.msra.mxu1 %v1061_v49 }
 0x14e   :  { %1011 = vmatprep.subr.bf16.mxu1 %v1129_v0 }
 0x1e3   :  { %v323_v59 = vpop.f32.mrb[0].mxu1 }
 0x1e4   :  { %v324_v60 = vadd.f32 %v783_v58, %v323_v59  ;;  %v923_v61 = vpop.f32.mrb[1].mxu1 }
 0x1e5   :  { %v326_v62 = vpop.f32.mrb[2].mxu1 }
 0x1e6   :  { %vm329_vm6 = vcmp.gt.f32.partialorder %v324_v60, 0.0  ;;  %v330_v63 = vmul.f32 0.01, %v324_v60  ;;  %v924_v1 = vpop.f32.mrb[3].mxu1 }
 0x1e8   :  { %v331_v2 = vsel %vm329_vm6, %v324_v60, %v330_v63 }
 0x1e9   :  { %v332_v3 = vpack.c.bf16 %v331_v2, %v331_v2 }
 0x1eb   :  { %1002 = vmatmul.mubr.bf16.vlgmr.msra.gmra.mrb[8].mxu1 %v332_v3 }
 0x1ec   :  { %1027 = vmatprep.mubr.msk.bf16.mxu1 %vm1130_vm0, %v1129_v0  ;;  %1012 = vmatpush3.bf16.msra.mxu1 %v1070_v16 }
 0x1ed   :  { %1013 = vmatprep.subr.bf16.mxu1 %v1129_v0 }
 0x1f0   :  { %1014 = vmatpush3.bf16.msra.mxu1 %v1071_v17 }
 0x1f1   :  { %1015 = vmatprep.subr.bf16.mxu1 %v1129_v0 }
 0x1f4   :  { %1016 = vmatpush3.bf16.msra.mxu1 %v1072_v18 }
 0x1f5   :  { %1017 = vmatprep.subr.bf16.mxu1 %v1129_v0 }
 0x1f8   :  { %1018 = vmatpush3.bf16.msra.mxu1 %v1073_v19 }
 0x1f9   :  { %1019 = vmatprep.subr.bf16.mxu1 %v1129_v0 }
 0x1fc   :  { %1020 = vmatpush3.bf16.msra.mxu1 %v1074_v20 }
 0x1fd   :  { %1021 = vmatprep.subr.bf16.mxu1 %v1129_v0 }
 0x200   :  { %1022 = vmatpush3.bf16.msra.mxu1 %v1075_v21 }
 0x201   :  { %1023 = vmatprep.subr.bf16.mxu1 %v1129_v0 }
 0x203   :  { %v416_v4 = vpop.f32.mrb[4].mxu1 }
 0x204   :  { %v417_v5 = vadd.f32 %v783_v58, %v416_v4  ;;  %v963_v6 = vpop.f32.mrb[5].mxu1  ;;  %1024 = vmatpush3.bf16.msra.mxu1 %v1076_v22 }
 0x205   :  { %v419_v7 = vpop.f32.mrb[6].mxu1  ;;  %1025 = vmatprep.subr.bf16.mxu1 %v1129_v0 }
 0x206   :  { %vm422_vm7 = vcmp.gt.f32.partialorder %v417_v5, 0.0  ;;  %v423_v8 = vmul.f32 0.01, %v417_v5  ;;  %v964_v9 = vpop.f32.mrb[7].mxu1 }
 0x208   :  { %v424_v11 = vsel %vm422_vm7, %v417_v5, %v423_v8  ;;  %1026 = vmatpush3.bf16.msra.mxu1 %v1077_v23 }
 0x209   :  { %v425_v12 = vpack.c.bf16 %v424_v11, %v424_v11 }
 0x20b   :  { %982 = vmatmul.mubr.bf16.vlgmr.msra.gmra.mrb[8].mxu0 %v425_v12 }
 0x20c   :  { %1006 = vmatpush3.bf16.msra.mxu0 %v610_v13  ;;  %1007 = vmatprep.mubr.msk.bf16.mxu0 %vm1130_vm0, %v1129_v0 }
 0x213   :  { %1008 = vmatmul.mubr.msk.bf16.vlgmr.msra.gmra.mrb[12].mxu0 %vm605_vm8, %v427_v15 }
 0x2be   :  { %v598_v24 = vpop.f32.mrb[8].mxu1 }
 0x2bf   :  { %v1003_v25 = vpop.f32.mrb[9].mxu1 }
 0x2c0   :  { %v601_v26 = vpop.f32.mrb[10].mxu1 }
 0x2c1   :  { %v1004_v27 = vpop.f32.mrb[11].mxu1 }
 0x2de   :  { %v510_v28 = vpop.f32.mrb[8].mxu0 }
 0x2df   :  { %v599_v29 = vadd.f32 %v598_v24, %v510_v28  ;;  %v983_v30 = vpop.f32.mrb[9].mxu0 }
 0x2e0   :  { %v513_v31 = vpop.f32.mrb[10].mxu0 }
 0x2e1   :  { %v984_v32 = vpop.f32.mrb[11].mxu0 }
 0x2e6   :  { %v646_v34 = vpop.f32.mrb[12].mxu0 }
 0x2e7   :  { %v652_v35 = vadd.f32 %v646_v34, %v599_v29  ;;  %v1009_v36 = vpop.f32.mrb[13].mxu0 }
 0x2e8   :  { %v649_v37 = vpop.f32.mrb[14].mxu0 }
 0x2e9   :  { %v657_v0 = vadd.f32 %v810_v33, %v652_v35  ;;  %v1010_v38 = vpop.f32.mrb[15].mxu0 }
 0x2eb   :  { %vm658_vm9 = vcmp.gt.f32.partialorder %v657_v0, 0.0  ;;  %v659_v39 = vmul.f32 0.01, %v657_v0 }
 0x2ed   :  { %v660_v40 = vsel %vm658_vm9, %v657_v0, %v659_v39 }
 0x2ee   :  { %v661_v41 = vpack.c.bf16 %v660_v40, %v660_v40 }
 0x2f0   :  { %1028 = vmatmul.mubr.bf16.vlgmr.msra.gmra.mrb[12].mxu1 %v661_v41 }
 0x3c3   :  { %v748_v43 = vpop.f32.mrb[12].mxu1 }
 0x3c4   :  { %v749_v44 = vadd.f32 %v811_v42, %v748_v43  ;;  %v1029_v45 = vpop.f32.mrb[13].mxu1 }
 0x3c5   :  { %v751_v46 = vpop.f32.mrb[14].mxu1 }
 0x3c6   :  { %v755_v47 = vmul.f32 0.01, %v749_v44  ;;  %v1030_v48 = vpop.f32.mrb[15].mxu1  ;;  %vm754_vm10 = vcmp.gt.f32.partialorder %v749_v44, 0.0 }
 0x3c8   :  { %v756_v49 = vsel %vm754_vm10, %v749_v44, %v755_v47 }
 0x3c9   :  { %757 = vst [vmem:[#allocation5] sm:$0xff] %v756_v49 }
 0x3ca   :  { %1111 = shalt.err (!%p1108_p12)
}
 0x3cb   :  { %s1112_s21 = scalar_lea.hbm %s1349_s7, 128 }
 0x3cc   :  { %p1113_p13 = scmp.ne.s32.totalorder %s1349_s7, %s1112_s21  ;;  %p1116_p0 = scmp.lt.u32.totalorder %s1112_s21, %s1349_s7 }
 0x3ce   :  { %p1118_p1 = pnand %p1116_p0, %p1113_p13 }
 0x3d0   :  { %1121 = shalt.err (!%p1118_p1)
}
 0x3d1   :  { %767 = dma.vmem_to_hbm [thread:$0]  %s765_s18, 128, %s1349_s7, [#allocation4]  }
 0x3d2   :  { %1124 = dma.done.wait [#allocation4], 128  }
 0x3d3   :  { %1125 = vsyncadd [#allocation4], 4294967168 }
 0x3d4   :  { %771 = vsyncpa [#allocation3], 1 }
 0x3d5   :  { %772 = vsyncpa [#allocation4], 1 }

</bundles_post_ra>
